<compile_context>
chip_gen: v6e
topology: v6e:2x2x1
jax: 0.10.0
libtpu: 0.0.40
codegen_flags: <defaults>
</compile_context>

<pallas_src>
import functools

import numpy as np
import jax
import jax.numpy as jnp
from jax.experimental import pallas as pl
from jax.experimental.pallas import tpu as pltpu


# ----------------------------------------------------------------------------
# Constant Haar "pick" matrix (W, W): maps s (or d) -> [low-pass | high-pass]
# along W, with the dwt_init /2 scaling folded in.  Entries 0 / +-0.5 are
# exact in bf16.
# ----------------------------------------------------------------------------
def _haar_pick_matrix(W):
    W2 = W // 2
    P = np.zeros((W, W), np.float32)
    j = np.arange(W2)
    P[2 * j, j] = 0.5          # low:  0.5*(v[2j] + v[2j+1])
    P[2 * j + 1, j] = 0.5
    P[2 * j, W2 + j] = -0.5    # high: 0.5*(-v[2j] + v[2j+1])
    P[2 * j + 1, W2 + j] = 0.5
    return P


# ----------------------------------------------------------------------------
# Pallas kernel
# ----------------------------------------------------------------------------
def _dwt_kernel(x_ref, p_ref, o_ref, *, compensate):
    # x_ref : (bt, 2W)   input dtype, rows packed as [even-h row | odd-h row]
    # p_ref : (W, W)     bf16 pick matrix (entries 0 / +-0.5, exact in bf16)
    # o_ref : (4, bt, W2) output dtype, per-subband slabs (LL, HL, LH, HH)
    w = p_ref.shape[0]
    w2 = w // 2

    x = x_ref[...].astype(jnp.float32)      # cast happens on-chip, not in HBM
    a = x[:, :w]                            # even-h row
    b = x[:, w:]                            # odd-h row
    s = a + b                               # H low-pass  (the /2 lives in P)
    d = b - a                               # H high-pass
    p = p_ref[...]

    if compensate:
        # Error-compensated bf16 split (f32/f16 inputs): ~1e-5 relative error.
        def pick(v):
            v_hi = v.astype(jnp.bfloat16)
            v_lo = (v - v_hi.astype(jnp.float32)).astype(jnp.bfloat16)
            y = jnp.dot(v_hi, p, preferred_element_type=jnp.float32)
            return y + jnp.dot(v_lo, p, preferred_element_type=jnp.float32)
    else:
        # Input is already bf16: a single MXU pass carries full input precision.
        def pick(v):
            return jnp.dot(v.astype(jnp.bfloat16), p,
                           preferred_element_type=jnp.float32)

    ys = pick(s)                            # (bt, W) = [LL | HL]
    yd = pick(d)                            # (bt, W) = [LH | HH]

    odt = o_ref.dtype
    # NOTE: for W2 >= 128 these slices/stores are lane-aligned and unmasked;
    # small-W inputs fall back to masked partial stores (still correct).
    o_ref[0] = ys[:, :w2].astype(odt)       # LL
    o_ref[1] = ys[:, w2:].astype(odt)       # HL
    o_ref[2] = yd[:, :w2].astype(odt)       # LH
    o_ref[3] = yd[:, w2:].astype(odt)       # HH


# ----------------------------------------------------------------------------
# Block sizing helpers (generation aware)
# ----------------------------------------------------------------------------
def _round_up(x, m):
    return ((x + m - 1) // m) * m


def _vmem_capacity_bytes():
    try:
        info = pltpu.get_tpu_info()
        cap = getattr(info, "vmem_capacity_bytes", None)
        if cap:
            return int(cap)
    except Exception:
        pass
    return 64 << 20  # conservative default (v7x per-TensorCore VMEM)


def _pick_row_block(rows, W, in_itemsize, out_itemsize, io_budget_bytes):
    """Largest sublane-aligned (multiple of 8) row block whose double-buffered
    input + output footprint fits the VMEM byte budget (byte budget, not a
    fixed row count, so small-W inputs get big blocks)."""
    per_row = 2 * (2 * W) * in_itemsize + 2 * 4 * (W // 2) * out_itemsize
    bt = io_budget_bytes // max(per_row, 1)
    bt = min(bt, _round_up(rows, 8))        # never bigger than (padded) rows
    bt = max(8, (bt // 8) * 8)              # sublane aligned, at least 8
    return int(bt)


# ----------------------------------------------------------------------------
# Public entry point (matches DWT.forward semantics, NCHW in / NCHW out)
# ----------------------------------------------------------------------------
def dwt_forward(x, out_dtype=None):
    """x: (N, C, H, W) -> (4N, C, H/2, W/2), cat order (LL, HL, LH, HH).
    Output dtype defaults to the input dtype (PyTorch semantics)."""
    N, C, H, W = x.shape
    if H % 2 or W % 2:
        raise ValueError("DWT requires even spatial dims")
    H2, W2 = H // 2, W // 2
    rows = N * C * H2

    in_dtype = np.dtype(x.dtype)
    out_dtype = np.dtype(in_dtype if out_dtype is None else out_dtype)

    # Free reshape: row p=(n,c,i) holds [x[n,c,2i,:] | x[n,c,2i+1,:]] on lanes.
    x_rows = x.reshape(rows, 2 * W)
    p = jnp.asarray(_haar_pick_matrix(W), dtype=jnp.bfloat16)

    # hi/lo compensation only when the input carries more than bf16 precision.
    compensate = in_dtype != np.dtype(jnp.bfloat16)

    # ---- generation-aware block sizing --------------------------------------
    vmem_cap = _vmem_capacity_bytes()
    io_budget = vmem_cap // 3               # ~21 MiB on v7x, ~42 MiB on v5e/v6e
    bt = _pick_row_block(rows, W, in_dtype.itemsize, out_dtype.itemsize, io_budget)
    grid = (pl.cdiv(rows, bt),)             # no exact-divisor requirement

    p_bytes = W * W * 2
    est_io = bt * 4 * W * (in_dtype.itemsize + out_dtype.itemsize)  # dbl-buffered
    vmem_limit = int(min(vmem_cap, max(est_io + 2 * p_bytes + (4 << 20), 32 << 20)))

    n_mm = 4 if compensate else 2
    cost = pl.CostEstimate(
        flops=n_mm * 2 * rows * W * W + 4 * rows * W,
        transcendentals=0,
        bytes_accessed=rows * 2 * W * in_dtype.itemsize
                       + 4 * rows * W2 * out_dtype.itemsize
                       + p_bytes,
    )

    out = pl.pallas_call(
        functools.partial(_dwt_kernel, compensate=compensate),
        out_shape=jax.ShapeDtypeStruct((4, rows, W2), out_dtype),
        grid=grid,
        in_specs=[
            pl.BlockSpec((bt, 2 * W), lambda r: (r, 0)),
            # Constant index_map: P is fetched once and stays VMEM-resident.
            # TODO(synk): pipeline_mode=pl.Buffered(1) would drop P's second
            # buffer; left off to stay on the known-good compile path.
            pl.BlockSpec((W, W), lambda r: (0, 0)),
        ],
        out_specs=pl.BlockSpec((4, bt, W2), lambda r: (0, r, 0)),
        compiler_params=pltpu.CompilerParams(
            # TODO(synk): pltpu.CORE_PARALLEL would shard the row axis across
            # v7x's two TensorCores; plain "parallel" kept for v5e/v6e safety.
            dimension_semantics=("parallel",),
            vmem_limit_bytes=vmem_limit,
        ),
        cost_estimate=cost,
    )(x_rows, p)

    # Free reshape: (4, N*C*H2, W2) == torch.cat((LL,HL,LH,HH), 0) layout.
    return out.reshape(4 * N, C, H2, W2)


# ----------------------------------------------------------------------------
# Pure-JAX reference (direct translation of dwt_init) for verification
# ----------------------------------------------------------------------------
def dwt_reference(x):
    x01 = x[:, :, 0::2, :] / 2
    x02 = x[:, :, 1::2, :] / 2
    x1 = x01[:, :, :, 0::2]
    x2 = x02[:, :, :, 0::2]
    x3 = x01[:, :, :, 1::2]
    x4 = x02[:, :, :, 1::2]
    x_LL = x1 + x2 + x3 + x4
    x_HL = -x1 - x2 + x3 + x4
    x_LH = -x1 + x2 - x3 + x4
    x_HH = x1 - x2 - x3 + x4
    return jnp.concatenate((x_LL, x_HL, x_LH, x_HH), axis=0)


if __name__ == "__main__":
    key = jax.random.PRNGKey(0)
    N, C, H, W = 2, 4, 16, 16
    x = jax.random.normal(key, (N, C, H, W), jnp.float32)

    fwd = jax.jit(dwt_forward)

    # f32 path (error-compensated bf16 matmuls, ~f32 accuracy, f32 output)
    out = jax.block_until_ready(fwd(x))
    assert out.shape == (4 * N, C, H // 2, W // 2), out.shape
    assert out.dtype == x.dtype, out.dtype
    ref = dwt_reference(x)
    max_err = float(jnp.max(jnp.abs(out - ref)))
    assert jnp.allclose(out, ref, atol=1e-3, rtol=1e-3), max_err

    # bf16 path (no wrapper promotion, single matmul per butterfly, bf16 out)
    x_bf16 = x.astype(jnp.bfloat16)
    out_bf = jax.block_until_ready(fwd(x_bf16))
    assert out_bf.dtype == jnp.bfloat16, out_bf.dtype
    ref_bf = dwt_reference(x_bf16.astype(jnp.float32))
    max_err_bf = float(jnp.max(jnp.abs(out_bf.astype(jnp.float32) - ref_bf)))
    assert jnp.allclose(out_bf.astype(jnp.float32), ref_bf,
                        atol=6e-2, rtol=5e-2), max_err_bf

    print("KERNEL_OK")
</pallas_src>

<mosaic_0001>
module attributes {stable_mosaic.version = 11 : i64} {
  func.func @_dwt_kernel(%arg0: i32, %arg1: memref<64x32xf32, #tpu.memory_space<vmem>>, %arg2: memref<16x16xbf16, #tpu.memory_space<vmem>>, %arg3: memref<4x64x8xf32, #tpu.memory_space<vmem>>) attributes {dimension_semantics = [#tpu.dimension_semantics<parallel>], iteration_bounds = array<i64: 1>, scalar_prefetch = 0 : i64, scratch_operands = 0 : i64, tpu.core_type = #tpu.core_type<tc>, window_params = [{transform_indices = @transform_0, window_bounds = array<i64: 64, 32>}, {pipeline_mode = #tpu.pipeline_mode<synchronous>, transform_indices = @transform_1, window_bounds = array<i64: 16, 16>}, {transform_indices = @transform_2, window_bounds = array<i64: 4, 64, 8>}]} {
    %c0 = arith.constant 0 : index
    %c0_0 = arith.constant 0 : index
    %0 = vector.load %arg1[%c0, %c0_0] : memref<64x32xf32, #tpu.memory_space<vmem>>, vector<64x32xf32>
    %1 = vector.extract_strided_slice %0 {offsets = [0, 0], sizes = [64, 16], strides = [1, 1]} : vector<64x32xf32> to vector<64x16xf32>
    %2 = vector.extract_strided_slice %0 {offsets = [0, 16], sizes = [64, 16], strides = [1, 1]} : vector<64x32xf32> to vector<64x16xf32>
    %3 = arith.addf %1, %2 : vector<64x16xf32>
    %4 = arith.subf %2, %1 : vector<64x16xf32>
    %c0_1 = arith.constant 0 : index
    %c0_2 = arith.constant 0 : index
    %5 = vector.load %arg2[%c0_1, %c0_2] : memref<16x16xbf16, #tpu.memory_space<vmem>>, vector<16x16xbf16>
    %6 = arith.truncf %3 : vector<64x16xf32> to vector<64x16xbf16>
    %7 = arith.extf %6 : vector<64x16xbf16> to vector<64x16xf32>
    %8 = arith.subf %3, %7 : vector<64x16xf32>
    %9 = arith.truncf %8 : vector<64x16xf32> to vector<64x16xbf16>
    %cst = arith.constant dense<0.000000e+00> : vector<64x16xf32>
    %10 = tpu.matmul %6, %5, %cst {dimension_numbers = #tpu.dot_dimension_numbers<[1], [0], [0], [1], [0, 0, 1, 1], [], []>} : vector<64x16xbf16>, vector<16x16xbf16>, vector<64x16xf32> -> vector<64x16xf32>
    %cst_3 = arith.constant dense<0.000000e+00> : vector<64x16xf32>
    %11 = tpu.matmul %9, %5, %cst_3 {dimension_numbers = #tpu.dot_dimension_numbers<[1], [0], [0], [1], [0, 0, 1, 1], [], []>} : vector<64x16xbf16>, vector<16x16xbf16>, vector<64x16xf32> -> vector<64x16xf32>
    %12 = arith.addf %10, %11 : vector<64x16xf32>
    %13 = arith.truncf %4 : vector<64x16xf32> to vector<64x16xbf16>
    %14 = arith.extf %13 : vector<64x16xbf16> to vector<64x16xf32>
    %15 = arith.subf %4, %14 : vector<64x16xf32>
    %16 = arith.truncf %15 : vector<64x16xf32> to vector<64x16xbf16>
    %cst_4 = arith.constant dense<0.000000e+00> : vector<64x16xf32>
    %17 = tpu.matmul %13, %5, %cst_4 {dimension_numbers = #tpu.dot_dimension_numbers<[1], [0], [0], [1], [0, 0, 1, 1], [], []>} : vector<64x16xbf16>, vector<16x16xbf16>, vector<64x16xf32> -> vector<64x16xf32>
    %cst_5 = arith.constant dense<0.000000e+00> : vector<64x16xf32>
    %18 = tpu.matmul %16, %5, %cst_5 {dimension_numbers = #tpu.dot_dimension_numbers<[1], [0], [0], [1], [0, 0, 1, 1], [], []>} : vector<64x16xbf16>, vector<16x16xbf16>, vector<64x16xf32> -> vector<64x16xf32>
    %19 = arith.addf %17, %18 : vector<64x16xf32>
    %20 = vector.extract_strided_slice %12 {offsets = [0, 0], sizes = [64, 8], strides = [1, 1]} : vector<64x16xf32> to vector<64x8xf32>
    %c0_6 = arith.constant 0 : index
    %c0_7 = arith.constant 0 : index
    %c0_8 = arith.constant 0 : index
    %21 = vector.load %arg3[%c0_6, %c0_7, %c0_8] : memref<4x64x8xf32, #tpu.memory_space<vmem>>, vector<1x64x8xf32>
    %22 = vector.shape_cast %21 : vector<1x64x8xf32> to vector<64x8xf32>
    %23 = vector.shape_cast %20 : vector<64x8xf32> to vector<1x64x8xf32>
    tpu.vector_store %arg3[%c0_6, %c0_7, %c0_8], %23 {strides = array<i32>} : memref<4x64x8xf32, #tpu.memory_space<vmem>>, vector<1x64x8xf32>,
    %24 = vector.extract_strided_slice %12 {offsets = [0, 8], sizes = [64, 8], strides = [1, 1]} : vector<64x16xf32> to vector<64x8xf32>
    %c1 = arith.constant 1 : index
    %c0_9 = arith.constant 0 : index
    %c0_10 = arith.constant 0 : index
    %25 = vector.load %arg3[%c1, %c0_9, %c0_10] : memref<4x64x8xf32, #tpu.memory_space<vmem>>, vector<1x64x8xf32>
    %26 = vector.shape_cast %25 : vector<1x64x8xf32> to vector<64x8xf32>
    %27 = vector.shape_cast %24 : vector<64x8xf32> to vector<1x64x8xf32>
    tpu.vector_store %arg3[%c1, %c0_9, %c0_10], %27 {strides = array<i32>} : memref<4x64x8xf32, #tpu.memory_space<vmem>>, vector<1x64x8xf32>,
    %28 = vector.extract_strided_slice %19 {offsets = [0, 0], sizes = [64, 8], strides = [1, 1]} : vector<64x16xf32> to vector<64x8xf32>
    %c2 = arith.constant 2 : index
    %c0_11 = arith.constant 0 : index
    %c0_12 = arith.constant 0 : index
    %29 = vector.load %arg3[%c2, %c0_11, %c0_12] : memref<4x64x8xf32, #tpu.memory_space<vmem>>, vector<1x64x8xf32>
    %30 = vector.shape_cast %29 : vector<1x64x8xf32> to vector<64x8xf32>
    %31 = vector.shape_cast %28 : vector<64x8xf32> to vector<1x64x8xf32>
    tpu.vector_store %arg3[%c2, %c0_11, %c0_12], %31 {strides = array<i32>} : memref<4x64x8xf32, #tpu.memory_space<vmem>>, vector<1x64x8xf32>,
    %32 = vector.extract_strided_slice %19 {offsets = [0, 8], sizes = [64, 8], strides = [1, 1]} : vector<64x16xf32> to vector<64x8xf32>
    %c3 = arith.constant 3 : index
    %c0_13 = arith.constant 0 : index
    %c0_14 = arith.constant 0 : index
    %33 = vector.load %arg3[%c3, %c0_13, %c0_14] : memref<4x64x8xf32, #tpu.memory_space<vmem>>, vector<1x64x8xf32>
    %34 = vector.shape_cast %33 : vector<1x64x8xf32> to vector<64x8xf32>
    %35 = vector.shape_cast %32 : vector<64x8xf32> to vector<1x64x8xf32>
    tpu.vector_store %arg3[%c3, %c0_13, %c0_14], %35 {strides = array<i32>} : memref<4x64x8xf32, #tpu.memory_space<vmem>>, vector<1x64x8xf32>,
    return
  }
  func.func @transform_0(%arg0: i32) -> (i32, i32) {
    %c0_i32 = arith.constant 0 : i32
    %c0_i32_0 = arith.constant 0 : i32
    return %arg0, %c0_i32 : i32, i32
  }
  func.func @transform_1(%arg0: i32) -> (i32, i32) {
    %c0_i32 = arith.constant 0 : i32
    %c0_i32_0 = arith.constant 0 : i32
    %c0_i32_1 = arith.constant 0 : i32
    return %c0_i32, %c0_i32_0 : i32, i32
  }
  func.func @transform_2(%arg0: i32) -> (i32, i32, i32) {
    %c0_i32 = arith.constant 0 : i32
    %c0_i32_0 = arith.constant 0 : i32
    %c0_i32_1 = arith.constant 0 : i32
    return %c0_i32, %arg0, %c0_i32_0 : i32, i32, i32
  }
}

</mosaic_0001>

<bundles_post_ra>
// kernel: dwt_forward.1
= control target key start
LH: loop header
LB: loop body
LE: loop exit
PB: predicated region body
PF: predicated region fallthrough
CT: control target
= control target key end

     0   :  { %s704_s13 = smov 16   ;;  %s893_s0 = inlined_call_operand.vmem [shape: f32[64,32], index: 0, kind: input, shape index: {}]   ;;  %s894_s1 = inlined_call_operand.vmem [shape: bf16[16,16], index: 1, kind: input, shape index: {}]   ;;  %s895_s2 = inlined_call_operand.hbm [shape: f32[4,64,8], index: 2, kind: output, shape index: {}]  }
   0x1   :  { %v728_v0 = vld [vmem:[%s893_s0 + $0x10] sm:$0xff]  ;;  %v733_v1 = vld [vmem:[%s893_s0] sm:$0xff]  ;;  %v740_v2 = vld [vmem:[%s893_s0 + $0x18] sm:$0xff] }
   0x2   :  { %65 = vrot.lane.b32.xlu1 %v728_v0, %s704_s13  ;;  %61 = vrot.lane.b32.xlu0 %v733_v1, %s704_s13  ;;  %v745_v3 = vld [vmem:[%s893_s0 + $0x8] sm:$0xff] }
   0x3   :  { %7 = vsyncpa [#allocation3], 0  ;;  %v752_v4 = vld [vmem:[%s893_s0 + $0x28] sm:$0xff]  ;;  %v757_v5 = vld [vmem:[%s893_s0 + $0x20] sm:$0xff]  ;;  %s705_s26 = smov 112   ;;  %vm125_vm0 = vcmask 130048  }
   0x4   :  { %v764_v6 = vld [vmem:[%s893_s0 + $0x38] sm:$0xff]  ;;  %v769_v7 = vld [vmem:[%s893_s0 + $0x30] sm:$0xff]  ;;  %v780_v8 = vld [vmem:[%s894_s1] sm:$0xff]   ;;  %vm482_vm1 = vcmask 64512   ;;  %s706_s0 = smov 120   ;;  %s707_s1 = smov [#allocation2]  }
   0x5   :  { %635 = vmatprep.subr.bf16.mxu0 %v780_v8  ;;  %645 = vmatprep.subr.bf16.mxu1 %v780_v8  ;;  %s587_s29 = sshll.u32 %s707_s1, 4  ;;  %s588_s29 = int_to_ptr.vmem [resolvable:$true] %s587_s29 }
   0x6   :  { %67 = vrot.lane.b32.xlu1 %v740_v2, %s704_s13  ;;  %63 = vrot.lane.b32.xlu0 %v745_v3, %s704_s13  ;;  %s682_s30 = scalar_lea.vmem %s588_s29, 4096  ;;  %p687_p1 = scmp.lt.s32.totalorder %s588_s29, %s588_s29 }
   0x7   :  { %636 = vmatpush3.bf16.msra.mxu0 %v780_v8  ;;  %646 = vmatpush3.bf16.msra.mxu1 %v780_v8  ;;  %p683_p0 = scmp.ne.s32.totalorder %s588_s29, %s682_s30  ;;  %p688_p2 = scmp.lt.s32.totalorder %s682_s30, %s682_s30 }
   0x8   :  { %655 = vmatprep.subr.bf16.mxu0 %v780_v8  ;;  %665 = vmatprep.subr.bf16.mxu1 %v780_v8 }
   0x9   :  { %p689_p3 = por %p688_p2, %p687_p1 }
   0xa   :  { %71 = vrot.lane.b32.xlu1 %v752_v4, %s704_s13  ;;  %69 = vrot.lane.b32.xlu0 %v757_v5, %s704_s13 }
   0xb   :  { %p690_p4 = pnand %p689_p3, %p683_p0 }
   0xe   :  { %75 = vrot.lane.b32.xlu1 %v764_v6, %s704_s13  ;;  %73 = vrot.lane.b32.xlu0 %v769_v7, %s704_s13 }
  0x12   :  { %31 = vrot.lane.b32.xlu1 %v745_v3, %s705_s26  ;;  %29 = vrot.lane.b32.xlu0 %v733_v1, %s705_s26 }
  0x16   :  { %35 = vrot.lane.b32.xlu1 %v740_v2, %s705_s26  ;;  %33 = vrot.lane.b32.xlu0 %v728_v0, %s705_s26 }
  0x1a   :  { %39 = vrot.lane.b32.xlu1 %v752_v4, %s705_s26  ;;  %37 = vrot.lane.b32.xlu0 %v757_v5, %s705_s26 }
  0x1e   :  { %43 = vrot.lane.b32.xlu1 %v764_v6, %s705_s26  ;;  %41 = vrot.lane.b32.xlu0 %v769_v7, %s705_s26 }
  0x74   :  { %v66_v9 = vpop.permute.xlu1 %65  ;;  %v62_v10 = vpop.permute.xlu0 %61 }
  0x75   :  { %v87_v11 = vsub.f32 %v728_v0, %v66_v9  ;;  %v85_v14 = vsub.f32 %v733_v1, %v62_v10 }
  0x78   :  { %v68_v12 = vpop.permute.xlu1 %67  ;;  %v64_v13 = vpop.permute.xlu0 %63 }
  0x79   :  { %v88_v15 = vsub.f32 %v740_v2, %v68_v12  ;;  %v86_v16 = vsub.f32 %v745_v3, %v64_v13 }
  0x7b   :  { %v281_v17 = vpack.c.bf16 %v88_v15, %v87_v11  ;;  %v280_v18 = vpack.c.bf16 %v86_v16, %v85_v14 }
  0x7c   :  { %v72_v19 = vpop.permute.xlu1 %71  ;;  %v70_v20 = vpop.permute.xlu0 %69 }
  0x7d   :  { %v286_v21 = vunpack.c.l.bf16 %v281_v17  ;;  %v287_v22 = vunpack.c.h.bf16 %v281_v17  ;;  %v284_v23 = vunpack.c.l.bf16 %v280_v18  ;;  %v285_v24 = vunpack.c.h.bf16 %v280_v18  ;;  %397 = vrot.lane.b32.xlu1 %v280_v18, %s705_s26 }
  0x7e   :  { %v90_v25 = vsub.f32 %v752_v4, %v72_v19  ;;  %v89_v26 = vsub.f32 %v757_v5, %v70_v20 }
  0x7f   :  { %v293_v27 = vsub.f32 %v86_v16, %v285_v24  ;;  %v292_v28 = vsub.f32 %v85_v14, %v284_v23  ;;  %v295_v29 = vsub.f32 %v88_v15, %v287_v22  ;;  %v294_v33 = vsub.f32 %v87_v11, %v286_v21 }
  0x80   :  { %v282_v30 = vpack.c.bf16 %v90_v25, %v89_v26  ;;  %v76_v31 = vpop.permute.xlu1 %75  ;;  %v74_v32 = vpop.permute.xlu0 %73 }
  0x81   :  { %v92_v34 = vsub.f32 %v764_v6, %v76_v31  ;;  %v91_v35 = vsub.f32 %v769_v7, %v74_v32  ;;  %399 = vrot.lane.b32.xlu1 %v281_v17, %s705_s26  ;;  %v300_v36 = vpack.c.bf16 %v293_v27, %v292_v28  ;;  %v301_v41 = vpack.c.bf16 %v295_v29, %v294_v33 }
  0x82   :  { %v288_v37 = vunpack.c.l.bf16 %v282_v30  ;;  %v289_v38 = vunpack.c.h.bf16 %v282_v30 }
  0x83   :  { %v283_v39 = vpack.c.bf16 %v92_v34, %v91_v35  ;;  %308 = vrot.lane.b32.xlu0 %v300_v36, %s705_s26 }
  0x84   :  { %v296_v40 = vsub.f32 %v89_v26, %v288_v37  ;;  %v297_v42 = vsub.f32 %v90_v25, %v289_v38  ;;  %v32_v43 = vpop.permute.xlu1 %31  ;;  %v30_v44 = vpop.permute.xlu0 %29 }
  0x85   :  { %v290_v45 = vunpack.c.l.bf16 %v283_v39  ;;  %v291_v46 = vunpack.c.h.bf16 %v283_v39  ;;  %401 = vrot.lane.b32.xlu1 %v282_v30, %s705_s26  ;;  %v54_v47 = vadd.f32 %v32_v43, %v745_v3  ;;  %v53_v48 = vadd.f32 %v30_v44, %v733_v1 }
  0x86   :  { %v302_v54 = vpack.c.bf16 %v297_v42, %v296_v40 }
  0x87   :  { %310 = vrot.lane.b32.xlu0 %v301_v41, %s705_s26  ;;  %v95_v49 = vpack.c.bf16 %v54_v47, %v53_v48  ;;  %v298_v50 = vsub.f32 %v91_v35, %v290_v45  ;;  %v299_v51 = vsub.f32 %v92_v34, %v291_v46 }
  0x88   :  { %v36_v52 = vpop.permute.xlu1 %35  ;;  %v34_v53 = vpop.permute.xlu0 %33 }
  0x89   :  { %403 = vrot.lane.b32.xlu1 %v283_v39, %s705_s26  ;;  %v99_v55 = vunpack.c.l.bf16 %v95_v49  ;;  %v56_v56 = vadd.f32 %v36_v52, %v740_v2  ;;  %v55_v57 = vadd.f32 %v34_v53, %v728_v0  ;;  %647 = vmatprep.mubr.msk.bf16.mxu1 %vm125_vm0, %v95_v49  ;;  %v100_v58 = vunpack.c.h.bf16 %v95_v49 }
  0x8a   :  { %v303_v61 = vpack.c.bf16 %v299_v51, %v298_v50 }
  0x8b   :  { %312 = vrot.lane.b32.xlu0 %v302_v54, %s705_s26  ;;  %v107_v59 = vsub.f32 %v53_v48, %v99_v55  ;;  %v96_v60 = vpack.c.bf16 %v56_v56, %v55_v57  ;;  %v108_v1 = vsub.f32 %v54_v47, %v100_v58 }
  0x8c   :  { %v40_v62 = vpop.permute.xlu1 %39  ;;  %v38_v63 = vpop.permute.xlu0 %37 }
  0x8d   :  { %v101_v3 = vunpack.c.l.bf16 %v96_v60  ;;  %v102_v9 = vunpack.c.h.bf16 %v96_v60  ;;  %v58_v10 = vadd.f32 %v40_v62, %v752_v4  ;;  %v57_v11 = vadd.f32 %v38_v63, %v757_v5  ;;  %648 = vmatmul.mubr.msk.bf16.vlgmr.msra.gmra.mxu1 %vm125_vm0, %v96_v60 }
  0x8e   :  { %v115_v0 = vpack.c.bf16 %v108_v1, %v107_v59  ;;  %666 = vmatpush3.bf16.msra.mxu1 %v780_v8 }
  0x8f   :  { %314 = vrot.lane.b32.xlu0 %v303_v61, %s705_s26  ;;  %v109_v2 = vsub.f32 %v55_v57, %v101_v3  ;;  %v110_v12 = vsub.f32 %v56_v56, %v102_v9  ;;  %v97_v13 = vpack.c.bf16 %v58_v10, %v57_v11 }
  0x90   :  { %v44_v14 = vpop.permute.xlu1 %43  ;;  %v42_v15 = vpop.permute.xlu0 %41  ;;  %637 = vmatprep.mubr.msk.bf16.mxu0 %vm125_vm0, %v115_v0 }
  0x91   :  { %v116_v16 = vpack.c.bf16 %v110_v12, %v109_v2  ;;  %v103_v17 = vunpack.c.l.bf16 %v97_v13  ;;  %v104_v18 = vunpack.c.h.bf16 %v97_v13  ;;  %v60_v4 = vadd.f32 %v44_v14, %v764_v6  ;;  %651 = vmatprep.mubr.msk.bf16.mxu1 %vm125_vm0, %v97_v13 }
  0x92   :  { %v59_v5 = vadd.f32 %v42_v15, %v769_v7 }
  0x93   :  { %v111_v19 = vsub.f32 %v57_v11, %v103_v17  ;;  %v112_v20 = vsub.f32 %v58_v10, %v104_v18  ;;  %638 = vmatmul.mubr.msk.bf16.vlgmr.msra.gmra.mxu0 %vm125_vm0, %v116_v16 }
  0x94   :  { %v98_v21 = vpack.c.bf16 %v60_v4, %v59_v5  ;;  %656 = vmatpush3.bf16.msra.mxu0 %v780_v8 }
  0x95   :  { %v117_v22 = vpack.c.bf16 %v112_v20, %v111_v19 }
  0x96   :  { %v105_v23 = vunpack.c.l.bf16 %v98_v21  ;;  %v106_v24 = vunpack.c.h.bf16 %v98_v21  ;;  %652 = vmatmul.mubr.msk.bf16.gmra.mxu1 %vm125_vm0, %v98_v21 }
  0x97   :  { %641 = vmatprep.mubr.msk.bf16.mxu0 %vm125_vm0, %v117_v22 }
  0x98   :  { %v113_v25 = vsub.f32 %v59_v5, %v105_v23  ;;  %v114_v6 = vsub.f32 %v60_v4, %v106_v24 }
  0x9a   :  { %v118_v26 = vpack.c.bf16 %v114_v6, %v113_v25 }
  0x9c   :  { %642 = vmatmul.mubr.msk.bf16.gmra.mxu0 %vm125_vm0, %v118_v26 }
  0xef   :  { %v398_v7 = vpop.permute.xlu1 %397 }
  0xf0   :  { %667 = vmatprep.mubr.msk.bf16.mxu1 %vm125_vm0, %v398_v7 }
  0xf3   :  { %v400_v27 = vpop.permute.xlu1 %399 }
  0xf4   :  { %668 = vmatmul.mubr.msk.bf16.vlgmr.msra.gmra.mxu1 %vm125_vm0, %v400_v27 }
  0xf5   :  { %v309_v28 = vpop.permute.xlu0 %308 }
  0xf6   :  { %657 = vmatprep.mubr.msk.bf16.mxu0 %vm125_vm0, %v309_v28 }
  0xf7   :  { %v402_v8 = vpop.permute.xlu1 %401 }
  0xf8   :  { %671 = vmatprep.mubr.msk.bf16.mxu1 %vm125_vm0, %v402_v8 }
  0xf9   :  { %v311_v29 = vpop.permute.xlu0 %310 }
  0xfa   :  { %658 = vmatmul.mubr.msk.bf16.vlgmr.msra.gmra.mxu0 %vm125_vm0, %v311_v29 }
  0xfb   :  { %v404_v30 = vpop.permute.xlu1 %403 }
  0xfc   :  { %672 = vmatmul.mubr.msk.bf16.gmra.mxu1 %vm125_vm0, %v404_v30 }
  0xfd   :  { %v313_v31 = vpop.permute.xlu0 %312 }
  0xfe   :  { %661 = vmatprep.mubr.msk.bf16.mxu0 %vm125_vm0, %v313_v31 }
 0x101   :  { %v315_v32 = vpop.permute.xlu0 %314 }
 0x102   :  { %662 = vmatmul.mubr.msk.bf16.gmra.mxu0 %vm125_vm0, %v315_v32 }
 0x14d   :  { %v649_v33 = vpop.f32.mrf.mxu1 }
 0x14f   :  { %v249_v34 = vpop.f32.mrf.mxu1 }
 0x151   :  { %v650_v35 = vpop.f32.mrf.mxu1 }
 0x153   :  { %v639_v36 = vpop.f32.mrf.mxu0  ;;  %v252_v37 = vpop.f32.mrf.mxu1 }
 0x154   :  { %v258_v38 = vadd.f32 %v649_v33, %v639_v36 }
 0x155   :  { %v172_v39 = vpop.f32.mrf.mxu0 }
 0x156   :  { %485 = vst.msk [vmem:[#allocation2 + $0x10] sm:$0xff] %vm482_vm1, %v258_v38  ;;  %v250_v40 = vadd.f32 %v249_v34, %v172_v39  ;;  %503 = vrot.lane.b32.xlu0 %v258_v38, %s706_s0  ;;  %v653_v41 = vpop.f32.mrf.mxu1 }
 0x157   :  { %v640_v42 = vpop.f32.mrf.mxu0 }
 0x158   :  { %483 = vst.msk [vmem:[#allocation2] sm:$0xff] %vm482_vm1, %v250_v40  ;;  %v261_v43 = vadd.f32 %v650_v35, %v640_v42  ;;  %v265_v46 = vpop.f32.mrf.mxu1 }
 0x159   :  { %v175_v44 = vpop.f32.mrf.mxu0 }
 0x15a   :  { %486 = vst.msk [vmem:[#allocation2 + $0x18] sm:$0xff] %vm482_vm1, %v261_v43  ;;  %v253_v45 = vadd.f32 %v252_v37, %v175_v44  ;;  %505 = vrot.lane.b32.xlu1 %v261_v43, %s706_s0  ;;  %499 = vrot.lane.b32.xlu0 %v250_v40, %s706_s0  ;;  %v654_v50 = vpop.f32.mrf.mxu1 }
 0x15c   :  { %484 = vst.msk [vmem:[#allocation2 + $0x8] sm:$0xff] %vm482_vm1, %v253_v45  ;;  %v643_v47 = vpop.f32.mrf.mxu0  ;;  %v268_v53 = vpop.f32.mrf.mxu1 }
 0x15d   :  { %v274_v48 = vadd.f32 %v653_v41, %v643_v47 }
 0x15e   :  { %v188_v49 = vpop.f32.mrf.mxu0  ;;  %501 = vrot.lane.b32.xlu1 %v253_v45, %s706_s0 }
 0x15f   :  { %489 = vst.msk [vmem:[#allocation2 + $0x30] sm:$0xff] %vm482_vm1, %v274_v48  ;;  %v266_v51 = vadd.f32 %v265_v46, %v188_v49  ;;  %511 = vrot.lane.b32.xlu0 %v274_v48, %s706_s0 }
 0x160   :  { %v644_v52 = vpop.f32.mrf.mxu0 }
 0x161   :  { %487 = vst.msk [vmem:[#allocation2 + $0x20] sm:$0xff] %vm482_vm1, %v266_v51  ;;  %v277_v54 = vadd.f32 %v654_v50, %v644_v52 }
 0x162   :  { %v191_v55 = vpop.f32.mrf.mxu0 }
 0x163   :  { %490 = vst.msk [vmem:[#allocation2 + $0x38] sm:$0xff] %vm482_vm1, %v277_v54  ;;  %513 = vrot.lane.b32.xlu1 %v277_v54, %s706_s0  ;;  %v269_v56 = vadd.f32 %v268_v53, %v191_v55  ;;  %507 = vrot.lane.b32.xlu0 %v266_v51, %s706_s0 }
 0x165   :  { %488 = vst.msk [vmem:[#allocation2 + $0x28] sm:$0xff] %vm482_vm1, %v269_v56 }
 0x167   :  { %509 = vrot.lane.b32.xlu1 %v269_v56, %s706_s0 }
 0x1b4   :  { %v669_v57 = vpop.f32.mrf.mxu1 }
 0x1b6   :  { %v451_v58 = vpop.f32.mrf.mxu1 }
 0x1b8   :  { %v670_v59 = vpop.f32.mrf.mxu1 }
 0x1ba   :  { %v659_v60 = vpop.f32.mrf.mxu0  ;;  %v454_v61 = vpop.f32.mrf.mxu1 }
 0x1bb   :  { %v460_v62 = vadd.f32 %v669_v57, %v659_v60 }
 0x1bc   :  { %v362_v63 = vpop.f32.mrf.mxu0  ;;  %v673_v1 = vpop.f32.mrf.mxu1 }
 0x1bd   :  { %535 = vst.msk [vmem:[#allocation2 + $0x90] sm:$0xff] %vm482_vm1, %v460_v62  ;;  %v452_v3 = vadd.f32 %v451_v58, %v362_v63  ;;  %553 = vrot.lane.b32.xlu0 %v460_v62, %s706_s0 }
 0x1be   :  { %v660_v9 = vpop.f32.mrf.mxu0  ;;  %v467_v11 = vpop.f32.mrf.mxu1 }
 0x1bf   :  { %533 = vst.msk [vmem:[#allocation2 + $0x80] sm:$0xff] %vm482_vm1, %v452_v3  ;;  %v463_v10 = vadd.f32 %v670_v59, %v660_v9 }
 0x1c0   :  { %v365_v0 = vpop.f32.mrf.mxu0  ;;  %v674_v13 = vpop.f32.mrf.mxu1 }
 0x1c1   :  { %536 = vst.msk [vmem:[#allocation2 + $0x98] sm:$0xff] %vm482_vm1, %v463_v10  ;;  %v455_v2 = vadd.f32 %v454_v61, %v365_v0  ;;  %549 = vrot.lane.b32.xlu0 %v452_v3, %s706_s0  ;;  %555 = vrot.lane.b32.xlu1 %v463_v10, %s706_s0 }
 0x1c2   :  { %v663_v12 = vpop.f32.mrf.mxu0  ;;  %v470_v18 = vpop.f32.mrf.mxu1 }
 0x1c3   :  { %534 = vst.msk [vmem:[#allocation2 + $0x88] sm:$0xff] %vm482_vm1, %v455_v2  ;;  %v476_v14 = vadd.f32 %v673_v1, %v663_v12 }
 0x1c4   :  { %v378_v15 = vpop.f32.mrf.mxu0 }
 0x1c5   :  { %539 = vst.msk [vmem:[#allocation2 + $0xb0] sm:$0xff] %vm482_vm1, %v476_v14  ;;  %v468_v16 = vadd.f32 %v467_v11, %v378_v15  ;;  %551 = vrot.lane.b32.xlu1 %v455_v2, %s706_s0 }
 0x1c6   :  { %v664_v17 = vpop.f32.mrf.mxu0 }
 0x1c7   :  { %537 = vst.msk [vmem:[#allocation2 + $0xa0] sm:$0xff] %vm482_vm1, %v468_v16  ;;  %v479_v4 = vadd.f32 %v674_v13, %v664_v17  ;;  %557 = vrot.lane.b32.xlu0 %v468_v16, %s706_s0 }
 0x1c8   :  { %v381_v5 = vpop.f32.mrf.mxu0  ;;  %v504_v19 = vpop.permute.xlu0 %503 }
 0x1c9   :  { %540 = vst.msk [vmem:[#allocation2 + $0xb8] sm:$0xff] %vm482_vm1, %v479_v4  ;;  %v471_v20 = vadd.f32 %v470_v18, %v381_v5  ;;  %526 = vst.msk [vmem:[#allocation2 + $0x50] sm:$0xff] %vm482_vm1, %v504_v19 }
 0x1cb   :  { %538 = vst.msk [vmem:[#allocation2 + $0xa8] sm:$0xff] %vm482_vm1, %v471_v20  ;;  %561 = vrot.lane.b32.xlu0 %v476_v14, %s706_s0  ;;  %559 = vrot.lane.b32.xlu1 %v471_v20, %s706_s0 }
 0x1cc   :  { %v506_v21 = vpop.permute.xlu1 %505  ;;  %v500_v22 = vpop.permute.xlu0 %499 }
 0x1cd   :  { %527 = vst.msk [vmem:[#allocation2 + $0x58] sm:$0xff] %vm482_vm1, %v506_v21  ;;  %524 = vst.msk [vmem:[#allocation2 + $0x40] sm:$0xff] %vm482_vm1, %v500_v22 }
 0x1cf   :  { %563 = vrot.lane.b32.xlu1 %v479_v4, %s706_s0 }
 0x1d0   :  { %v502_v23 = vpop.permute.xlu1 %501 }
 0x1d1   :  { %525 = vst.msk [vmem:[#allocation2 + $0x48] sm:$0xff] %vm482_vm1, %v502_v23  ;;  %v512_v24 = vpop.permute.xlu0 %511 }
 0x1d2   :  { %530 = vst.msk [vmem:[#allocation2 + $0x70] sm:$0xff] %vm482_vm1, %v512_v24 }
 0x1d5   :  { %v514_v25 = vpop.permute.xlu1 %513  ;;  %v508_v6 = vpop.permute.xlu0 %507 }
 0x1d6   :  { %531 = vst.msk [vmem:[#allocation2 + $0x78] sm:$0xff] %vm482_vm1, %v514_v25  ;;  %528 = vst.msk [vmem:[#allocation2 + $0x60] sm:$0xff] %vm482_vm1, %v508_v6 }
 0x1d9   :  { %v510_v26 = vpop.permute.xlu1 %509 }
 0x1da   :  { %529 = vst.msk [vmem:[#allocation2 + $0x68] sm:$0xff] %vm482_vm1, %v510_v26 }
 0x22f   :  { %v554_v7 = vpop.permute.xlu0 %553 }
 0x230   :  { %576 = vst.msk [vmem:[#allocation2 + $0xd0] sm:$0xff] %vm482_vm1, %v554_v7 }
 0x233   :  { %v556_v27 = vpop.permute.xlu1 %555  ;;  %v550_v28 = vpop.permute.xlu0 %549 }
 0x234   :  { %577 = vst.msk [vmem:[#allocation2 + $0xd8] sm:$0xff] %vm482_vm1, %v556_v27  ;;  %574 = vst.msk [vmem:[#allocation2 + $0xc0] sm:$0xff] %vm482_vm1, %v550_v28 }
 0x237   :  { %v552_v8 = vpop.permute.xlu1 %551 }
 0x238   :  { %575 = vst.msk [vmem:[#allocation2 + $0xc8] sm:$0xff] %vm482_vm1, %v552_v8 }
 0x239   :  { %v558_v29 = vpop.permute.xlu0 %557 }
 0x23a   :  { %578 = vst.msk [vmem:[#allocation2 + $0xe0] sm:$0xff] %vm482_vm1, %v558_v29 }
 0x23d   :  { %v560_v30 = vpop.permute.xlu1 %559  ;;  %v562_v31 = vpop.permute.xlu0 %561 }
 0x23e   :  { %579 = vst.msk [vmem:[#allocation2 + $0xe8] sm:$0xff] %vm482_vm1, %v560_v30  ;;  %580 = vst.msk [vmem:[#allocation2 + $0xf0] sm:$0xff] %vm482_vm1, %v562_v31 }
 0x241   :  { %v564_v32 = vpop.permute.xlu1 %563 }
 0x242   :  { %581 = vst.msk [vmem:[#allocation2 + $0xf8] sm:$0xff] %vm482_vm1, %v564_v32 }
 0x243   :  { %693 = shalt.err (!%p690_p4)
}
 0x244   :  { %s708_s3 = smov 128   ;;  %s709_s4 = smov 8  }
 0x245   :  { %593 = dma.vmem_to_hbm [thread:$0]  %s588_s29, 4096, %s895_s2, [#allocation3], %s708_s3, %s708_s3, %s709_s4  }
 0x246   :  { %702 = dma.done.wait [#allocation3], 4096  }
 0x247   :  { %703 = vsyncadd [#allocation3], 4294963200 }
 0x248   :  { %597 = vsyncpa [#allocation3], 1 }

</bundles_post_ra>
